<compile_context>
chip_gen: v7x
topology: tpu7x:2x2x1
jax: 0.10.0
libtpu: 0.0.40
codegen_flags: <defaults>
</compile_context>

<pallas_src>
import math

import jax
import jax.numpy as jnp
import numpy as np
from jax import lax
from jax.experimental import pallas as pl
from jax.experimental.pallas import tpu as pltpu

D_MODEL = 64
NUM_HEADS = 4
HEAD_DIM = D_MODEL // NUM_HEADS  # 16
SEQ = 8
BATCH = 4
MASK_VALUE = -1e30


def mha_kernel(x_ref, mask_ref, wq_ref, bq_ref, wk_ref, bk_ref,
               wvo_ref, bvo_ref, bo_ref, out_ref):
    """One sequence per grid step; all weights VMEM-resident (pinned blocks).

    x_ref:   [1, S, D]
    mask_ref:[S, S]      additive causal mask (0 / -1e30)
    wq/wk:   [D, D]      head-packed projection weights (x @ w)
    bq/bk:   [1, D]      head-packed biases
    wvo:     [H, D, D]   per-head value weight with Wo folded in
    bvo:     [H, 1, D]   per-head folded value bias
    bo:      [1, D]      output bias
    out_ref: [1, S, D]
    """
    x = x_ref[0]                                            # [S, D] f32
    mask = mask_ref[...]                                    # [S, S]
    scale = 1.0 / math.sqrt(HEAD_DIM)

    # Fused Q / K projections for all heads (2 matmuls instead of 8).
    q_all = jnp.dot(x, wq_ref[...], preferred_element_type=jnp.float32) + bq_ref[...]
    k_all = jnp.dot(x, wk_ref[...], preferred_element_type=jnp.float32) + bk_ref[...]

    acc = jnp.zeros((SEQ, D_MODEL), jnp.float32)
    for h in range(NUM_HEADS):                              # static unroll, 4 heads
        q = q_all[:, h * HEAD_DIM:(h + 1) * HEAD_DIM]       # [S, Dh]
        k = k_all[:, h * HEAD_DIM:(h + 1) * HEAD_DIM]       # [S, Dh]

        # scores = Q @ K^T / sqrt(head_dim) + additive causal mask
        scores = lax.dot_general(
            q, k, (((1,), (1,)), ((), ())),
            preferred_element_type=jnp.float32) * scale + mask   # [S, S]

        # row softmax (== F.softmax default dim for 2-D input)
        m = jnp.max(scores, axis=-1, keepdims=True)
        e = jnp.exp(scores - m)
        p = e * pl.reciprocal(jnp.sum(e, axis=-1, keepdims=True), approx=False)

        # value path with Wo folded in: lane-dense [S, 64] per head, no concat.
        vf = jnp.dot(x, wvo_ref[h], preferred_element_type=jnp.float32) + bvo_ref[h]
        acc = acc + jnp.dot(p, vf, preferred_element_type=jnp.float32)

    out_ref[0] = (acc + bo_ref[...]).astype(out_ref.dtype)


def _pinned(block_shape):
    nd = len(block_shape)
    return pl.BlockSpec(block_shape, lambda b, _nd=nd: (0,) * _nd)


def multi_attension(x, packed):
    """x: [B, S, D] -> [B, S, D]."""
    b_total = x.shape[0]
    return pl.pallas_call(
        mha_kernel,
        out_shape=jax.ShapeDtypeStruct((b_total, SEQ, D_MODEL), x.dtype),
        grid=(b_total,),
        in_specs=[
            pl.BlockSpec((1, SEQ, D_MODEL), lambda b: (b, 0, 0)),        # x
            _pinned((SEQ, SEQ)),                                         # mask
            _pinned((D_MODEL, D_MODEL)), _pinned((1, D_MODEL)),          # wq, bq
            _pinned((D_MODEL, D_MODEL)), _pinned((1, D_MODEL)),          # wk, bk
            _pinned((NUM_HEADS, D_MODEL, D_MODEL)),                      # wvo
            _pinned((NUM_HEADS, 1, D_MODEL)),                            # bvo
            _pinned((1, D_MODEL)),                                       # bo
        ],
        out_specs=pl.BlockSpec((1, SEQ, D_MODEL), lambda b: (b, 0, 0)),
        compiler_params=pltpu.CompilerParams(
            dimension_semantics=("parallel",)),
    )(x, packed["mask"],
      packed["wq"], packed["bq"],
      packed["wk"], packed["bk"],
      packed["wvo"], packed["bvo"], packed["bo"])


def init_params(key):
    """Deterministic nn.Linear-style init (uniform +-1/sqrt(fan_in)), raw layout."""
    keys = jax.random.split(key, 2 * (3 * NUM_HEADS + 1))

    def linear(kw, kb, in_dim, out_dim):
        bound = 1.0 / math.sqrt(in_dim)
        w = jax.random.uniform(kw, (out_dim, in_dim), jnp.float32, -bound, bound)
        b = jax.random.uniform(kb, (out_dim,), jnp.float32, -bound, bound)
        return w, b

    wq, bq, wk, bk, wv, bv = [], [], [], [], [], []
    ki = 0
    for _ in range(NUM_HEADS):
        for wlist, blist in ((wq, bq), (wk, bk), (wv, bv)):
            w, b = linear(keys[ki], keys[ki + 1], D_MODEL, HEAD_DIM)
            ki += 2
            wlist.append(w)               # [Dh, D]  (torch nn.Linear layout)
            blist.append(b)               # [Dh]
    wo, bo = linear(keys[ki], keys[ki + 1], D_MODEL, D_MODEL)

    return {
        "wq": jnp.stack(wq), "bq": jnp.stack(bq),   # [H, Dh, D], [H, Dh]
        "wk": jnp.stack(wk), "bk": jnp.stack(bk),
        "wv": jnp.stack(wv), "bv": jnp.stack(bv),
        "wo": wo,                                   # [D, D]
        "bo": bo,                                   # [D]
    }


def pack_params(raw):
    """Pack/fold weights for the kernel: fused QK + Wo folded into V path."""
    # Head-packed Q/K projections: x @ wq_packed gives head h in cols h*Dh:(h+1)*Dh.
    wq_packed = jnp.concatenate([raw["wq"][h].T for h in range(NUM_HEADS)], axis=1)
    bq_packed = jnp.concatenate([raw["bq"][h] for h in range(NUM_HEADS)])[None, :]
    wk_packed = jnp.concatenate([raw["wk"][h].T for h in range(NUM_HEADS)], axis=1)
    bk_packed = jnp.concatenate([raw["bk"][h] for h in range(NUM_HEADS)])[None, :]

    # Fold Wo into the value path (exact: matmul associativity).
    wo_t = raw["wo"].T                                   # [D, D], out = A @ wo_t + bo
    wvo, bvo = [], []
    for h in range(NUM_HEADS):
        wo_rows = wo_t[h * HEAD_DIM:(h + 1) * HEAD_DIM, :]          # [Dh, D]
        wvo.append(raw["wv"][h].T @ wo_rows)                        # [D, D]
        bvo.append(raw["bv"][h][None, :] @ wo_rows)                 # [1, D]

    # Precomputed additive causal mask (torch.triu diagonal=1 -> masked above diag).
    row = np.arange(SEQ)[:, None]
    col = np.arange(SEQ)[None, :]
    mask = jnp.asarray(np.where(col <= row, 0.0, MASK_VALUE), dtype=jnp.float32)

    return {
        "mask": mask,
        "wq": wq_packed, "bq": bq_packed,            # [D, D], [1, D]
        "wk": wk_packed, "bk": bk_packed,
        "wvo": jnp.stack(wvo),                       # [H, D, D]
        "bvo": jnp.stack(bvo),                       # [H, 1, D]
        "bo": raw["bo"][None, :],                    # [1, D]
    }


def reference_single(x, raw):
    """Pure-JAX reference mirroring the PyTorch forward for one [S, D] sequence."""
    s_len = x.shape[0]
    scale = 1.0 / math.sqrt(HEAD_DIM)
    allowed = np.tril(np.ones((s_len, s_len), dtype=bool))
    heads = []
    for h in range(NUM_HEADS):
        q = x @ raw["wq"][h].T + raw["bq"][h]
        k = x @ raw["wk"][h].T + raw["bk"][h]
        v = x @ raw["wv"][h].T + raw["bv"][h]
        scores = (q @ k.T) * scale
        scores = jnp.where(allowed, scores, -jnp.inf)
        p = jax.nn.softmax(scores, axis=-1)
        heads.append(p @ v)
    a = jnp.concatenate(heads, axis=-1)
    return a @ raw["wo"].T + raw["bo"]


if __name__ == "__main__":
    key = jax.random.PRNGKey(0)
    kx, kp = jax.random.split(key)
    x = jax.random.normal(kx, (BATCH, SEQ, D_MODEL), dtype=jnp.float32)

    raw = init_params(kp)
    packed = pack_params(raw)

    out = multi_attension(x, packed)
    out = jax.block_until_ready(out)

    ref = jax.vmap(lambda xb: reference_single(xb, raw))(x)
    np.testing.assert_allclose(np.asarray(out), np.asarray(ref),
                               rtol=1e-5, atol=1e-5)
    print("KERNEL_OK")
</pallas_src>

<mosaic_0001>
module attributes {stable_mosaic.version = 11 : i64} {
  func.func @mha_kernel(%arg0: i32, %arg1: memref<1x8x64xf32, #tpu.memory_space<vmem>>, %arg2: memref<8x8xf32, #tpu.memory_space<vmem>>, %arg3: memref<64x64xf32, #tpu.memory_space<vmem>>, %arg4: memref<1x64xf32, #tpu.memory_space<vmem>>, %arg5: memref<64x64xf32, #tpu.memory_space<vmem>>, %arg6: memref<1x64xf32, #tpu.memory_space<vmem>>, %arg7: memref<4x64x64xf32, #tpu.memory_space<vmem>>, %arg8: memref<4x1x64xf32, #tpu.memory_space<vmem>>, %arg9: memref<1x64xf32, #tpu.memory_space<vmem>>, %arg10: memref<1x8x64xf32, #tpu.memory_space<vmem>>) attributes {dimension_semantics = [#tpu.dimension_semantics<parallel>], iteration_bounds = array<i64: 4>, scalar_prefetch = 0 : i64, scratch_operands = 0 : i64, tpu.core_type = #tpu.core_type<tc>, window_params = [{transform_indices = @transform_0, window_bounds = array<i64: 1, 8, 64>}, {pipeline_mode = #tpu.pipeline_mode<synchronous>, transform_indices = @transform_1, window_bounds = array<i64: 8, 8>}, {pipeline_mode = #tpu.pipeline_mode<synchronous>, transform_indices = @transform_2, window_bounds = array<i64: 64, 64>}, {pipeline_mode = #tpu.pipeline_mode<synchronous>, transform_indices = @transform_3, window_bounds = array<i64: 1, 64>}, {pipeline_mode = #tpu.pipeline_mode<synchronous>, transform_indices = @transform_4, window_bounds = array<i64: 64, 64>}, {pipeline_mode = #tpu.pipeline_mode<synchronous>, transform_indices = @transform_5, window_bounds = array<i64: 1, 64>}, {pipeline_mode = #tpu.pipeline_mode<synchronous>, transform_indices = @transform_6, window_bounds = array<i64: 4, 64, 64>}, {pipeline_mode = #tpu.pipeline_mode<synchronous>, transform_indices = @transform_7, window_bounds = array<i64: 4, 1, 64>}, {pipeline_mode = #tpu.pipeline_mode<synchronous>, transform_indices = @transform_8, window_bounds = array<i64: 1, 64>}, {transform_indices = @transform_9, window_bounds = array<i64: 1, 8, 64>}]} {
    %c0 = arith.constant 0 : index
    %c0_0 = arith.constant 0 : index
    %c0_1 = arith.constant 0 : index
    %0 = vector.load %arg1[%c0, %c0_0, %c0_1] : memref<1x8x64xf32, #tpu.memory_space<vmem>>, vector<1x8x64xf32>
    %1 = vector.shape_cast %0 : vector<1x8x64xf32> to vector<8x64xf32>
    %c0_2 = arith.constant 0 : index
    %c0_3 = arith.constant 0 : index
    %2 = vector.load %arg2[%c0_2, %c0_3] : memref<8x8xf32, #tpu.memory_space<vmem>>, vector<8x8xf32>
    %c0_4 = arith.constant 0 : index
    %c0_5 = arith.constant 0 : index
    %3 = vector.load %arg3[%c0_4, %c0_5] : memref<64x64xf32, #tpu.memory_space<vmem>>, vector<64x64xf32>
    %cst = arith.constant dense<0.000000e+00> : vector<8x64xf32>
    %4 = tpu.matmul %1, %3, %cst {dimension_numbers = #tpu.dot_dimension_numbers<[1], [0], [0], [1], [0, 0, 1, 1], [], []>} : vector<8x64xf32>, vector<64x64xf32>, vector<8x64xf32> -> vector<8x64xf32>
    %c0_6 = arith.constant 0 : index
    %c0_7 = arith.constant 0 : index
    %5 = vector.load %arg4[%c0_6, %c0_7] : memref<1x64xf32, #tpu.memory_space<vmem>>, vector<1x64xf32>
    %6 = vector.broadcast %5 : vector<1x64xf32> to vector<8x64xf32>
    %7 = arith.addf %4, %6 : vector<8x64xf32>
    %c0_8 = arith.constant 0 : index
    %c0_9 = arith.constant 0 : index
    %8 = vector.load %arg5[%c0_8, %c0_9] : memref<64x64xf32, #tpu.memory_space<vmem>>, vector<64x64xf32>
    %cst_10 = arith.constant dense<0.000000e+00> : vector<8x64xf32>
    %9 = tpu.matmul %1, %8, %cst_10 {dimension_numbers = #tpu.dot_dimension_numbers<[1], [0], [0], [1], [0, 0, 1, 1], [], []>} : vector<8x64xf32>, vector<64x64xf32>, vector<8x64xf32> -> vector<8x64xf32>
    %c0_11 = arith.constant 0 : index
    %c0_12 = arith.constant 0 : index
    %10 = vector.load %arg6[%c0_11, %c0_12] : memref<1x64xf32, #tpu.memory_space<vmem>>, vector<1x64xf32>
    %11 = vector.broadcast %10 : vector<1x64xf32> to vector<8x64xf32>
    %12 = arith.addf %9, %11 : vector<8x64xf32>
    %cst_13 = arith.constant 0.000000e+00 : f32
    %13 = vector.broadcast %cst_13 : f32 to vector<8x64xf32>
    %14 = vector.extract_strided_slice %7 {offsets = [0, 0], sizes = [8, 16], strides = [1, 1]} : vector<8x64xf32> to vector<8x16xf32>
    %15 = vector.extract_strided_slice %12 {offsets = [0, 0], sizes = [8, 16], strides = [1, 1]} : vector<8x64xf32> to vector<8x16xf32>
    %cst_14 = arith.constant dense<0.000000e+00> : vector<8x8xf32>
    %16 = tpu.matmul %14, %15, %cst_14 {dimension_numbers = #tpu.dot_dimension_numbers<[1], [1], [0], [0], [0, 0, 1, 0], [], []>} : vector<8x16xf32>, vector<8x16xf32>, vector<8x8xf32> -> vector<8x8xf32>
    %cst_15 = arith.constant 2.500000e-01 : f32
    %17 = vector.broadcast %cst_15 : f32 to vector<8x8xf32>
    %18 = arith.mulf %16, %17 : vector<8x8xf32>
    %19 = arith.addf %18, %2 : vector<8x8xf32>
    %cst_16 = arith.constant dense<0xFF800000> : vector<8xf32>
    %20 = vector.multi_reduction <maximumf>, %19, %cst_16 [1] : vector<8x8xf32> to vector<8xf32>
    %21 = vector.shape_cast %20 : vector<8xf32> to vector<8x1xf32>
    %22 = vector.broadcast %21 : vector<8x1xf32> to vector<8x8xf32>
    %23 = arith.subf %19, %22 : vector<8x8xf32>
    %24 = math.exp %23 : vector<8x8xf32>
    %cst_17 = arith.constant dense<0.000000e+00> : vector<8xf32>
    %25 = vector.multi_reduction <add>, %24, %cst_17 [1] : vector<8x8xf32> to vector<8xf32>
    %26 = vector.shape_cast %25 : vector<8xf32> to vector<8x1xf32>
    %27 = tpu.reciprocal %26 : vector<8x1xf32> -> vector<8x1xf32>
    %28 = vector.broadcast %27 : vector<8x1xf32> to vector<8x8xf32>
    %29 = arith.mulf %24, %28 : vector<8x8xf32>
    %c0_18 = arith.constant 0 : index
    %c0_19 = arith.constant 0 : index
    %c0_20 = arith.constant 0 : index
    %30 = vector.load %arg7[%c0_18, %c0_19, %c0_20] : memref<4x64x64xf32, #tpu.memory_space<vmem>>, vector<1x64x64xf32>
    %31 = vector.shape_cast %30 : vector<1x64x64xf32> to vector<64x64xf32>
    %cst_21 = arith.constant dense<0.000000e+00> : vector<8x64xf32>
    %32 = tpu.matmul %1, %31, %cst_21 {dimension_numbers = #tpu.dot_dimension_numbers<[1], [0], [0], [1], [0, 0, 1, 1], [], []>} : vector<8x64xf32>, vector<64x64xf32>, vector<8x64xf32> -> vector<8x64xf32>
    %c0_22 = arith.constant 0 : index
    %c0_23 = arith.constant 0 : index
    %c0_24 = arith.constant 0 : index
    %33 = vector.load %arg8[%c0_22, %c0_23, %c0_24] : memref<4x1x64xf32, #tpu.memory_space<vmem>>, vector<1x1x64xf32>
    %34 = vector.shape_cast %33 : vector<1x1x64xf32> to vector<1x64xf32>
    %35 = vector.broadcast %34 : vector<1x64xf32> to vector<8x64xf32>
    %36 = arith.addf %32, %35 : vector<8x64xf32>
    %cst_25 = arith.constant dense<0.000000e+00> : vector<8x64xf32>
    %37 = tpu.matmul %29, %36, %cst_25 {dimension_numbers = #tpu.dot_dimension_numbers<[1], [0], [0], [1], [0, 0, 1, 1], [], []>} : vector<8x8xf32>, vector<8x64xf32>, vector<8x64xf32> -> vector<8x64xf32>
    %38 = arith.addf %13, %37 : vector<8x64xf32>
    %39 = vector.extract_strided_slice %7 {offsets = [0, 16], sizes = [8, 16], strides = [1, 1]} : vector<8x64xf32> to vector<8x16xf32>
    %40 = vector.extract_strided_slice %12 {offsets = [0, 16], sizes = [8, 16], strides = [1, 1]} : vector<8x64xf32> to vector<8x16xf32>
    %cst_26 = arith.constant dense<0.000000e+00> : vector<8x8xf32>
    %41 = tpu.matmul %39, %40, %cst_26 {dimension_numbers = #tpu.dot_dimension_numbers<[1], [1], [0], [0], [0, 0, 1, 0], [], []>} : vector<8x16xf32>, vector<8x16xf32>, vector<8x8xf32> -> vector<8x8xf32>
    %cst_27 = arith.constant 2.500000e-01 : f32
    %42 = vector.broadcast %cst_27 : f32 to vector<8x8xf32>
    %43 = arith.mulf %41, %42 : vector<8x8xf32>
    %44 = arith.addf %43, %2 : vector<8x8xf32>
    %cst_28 = arith.constant dense<0xFF800000> : vector<8xf32>
    %45 = vector.multi_reduction <maximumf>, %44, %cst_28 [1] : vector<8x8xf32> to vector<8xf32>
    %46 = vector.shape_cast %45 : vector<8xf32> to vector<8x1xf32>
    %47 = vector.broadcast %46 : vector<8x1xf32> to vector<8x8xf32>
    %48 = arith.subf %44, %47 : vector<8x8xf32>
    %49 = math.exp %48 : vector<8x8xf32>
    %cst_29 = arith.constant dense<0.000000e+00> : vector<8xf32>
    %50 = vector.multi_reduction <add>, %49, %cst_29 [1] : vector<8x8xf32> to vector<8xf32>
    %51 = vector.shape_cast %50 : vector<8xf32> to vector<8x1xf32>
    %52 = tpu.reciprocal %51 : vector<8x1xf32> -> vector<8x1xf32>
    %53 = vector.broadcast %52 : vector<8x1xf32> to vector<8x8xf32>
    %54 = arith.mulf %49, %53 : vector<8x8xf32>
    %c1 = arith.constant 1 : index
    %c0_30 = arith.constant 0 : index
    %c0_31 = arith.constant 0 : index
    %55 = vector.load %arg7[%c1, %c0_30, %c0_31] : memref<4x64x64xf32, #tpu.memory_space<vmem>>, vector<1x64x64xf32>
    %56 = vector.shape_cast %55 : vector<1x64x64xf32> to vector<64x64xf32>
    %cst_32 = arith.constant dense<0.000000e+00> : vector<8x64xf32>
    %57 = tpu.matmul %1, %56, %cst_32 {dimension_numbers = #tpu.dot_dimension_numbers<[1], [0], [0], [1], [0, 0, 1, 1], [], []>} : vector<8x64xf32>, vector<64x64xf32>, vector<8x64xf32> -> vector<8x64xf32>
    %c1_33 = arith.constant 1 : index
    %c0_34 = arith.constant 0 : index
    %c0_35 = arith.constant 0 : index
    %58 = vector.load %arg8[%c1_33, %c0_34, %c0_35] : memref<4x1x64xf32, #tpu.memory_space<vmem>>, vector<1x1x64xf32>
    %59 = vector.shape_cast %58 : vector<1x1x64xf32> to vector<1x64xf32>
    %60 = vector.broadcast %59 : vector<1x64xf32> to vector<8x64xf32>
    %61 = arith.addf %57, %60 : vector<8x64xf32>
    %cst_36 = arith.constant dense<0.000000e+00> : vector<8x64xf32>
    %62 = tpu.matmul %54, %61, %cst_36 {dimension_numbers = #tpu.dot_dimension_numbers<[1], [0], [0], [1], [0, 0, 1, 1], [], []>} : vector<8x8xf32>, vector<8x64xf32>, vector<8x64xf32> -> vector<8x64xf32>
    %63 = arith.addf %38, %62 : vector<8x64xf32>
    %64 = vector.extract_strided_slice %7 {offsets = [0, 32], sizes = [8, 16], strides = [1, 1]} : vector<8x64xf32> to vector<8x16xf32>
    %65 = vector.extract_strided_slice %12 {offsets = [0, 32], sizes = [8, 16], strides = [1, 1]} : vector<8x64xf32> to vector<8x16xf32>
    %cst_37 = arith.constant dense<0.000000e+00> : vector<8x8xf32>
    %66 = tpu.matmul %64, %65, %cst_37 {dimension_numbers = #tpu.dot_dimension_numbers<[1], [1], [0], [0], [0, 0, 1, 0], [], []>} : vector<8x16xf32>, vector<8x16xf32>, vector<8x8xf32> -> vector<8x8xf32>
    %cst_38 = arith.constant 2.500000e-01 : f32
    %67 = vector.broadcast %cst_38 : f32 to vector<8x8xf32>
    %68 = arith.mulf %66, %67 : vector<8x8xf32>
    %69 = arith.addf %68, %2 : vector<8x8xf32>
    %cst_39 = arith.constant dense<0xFF800000> : vector<8xf32>
    %70 = vector.multi_reduction <maximumf>, %69, %cst_39 [1] : vector<8x8xf32> to vector<8xf32>
    %71 = vector.shape_cast %70 : vector<8xf32> to vector<8x1xf32>
    %72 = vector.broadcast %71 : vector<8x1xf32> to vector<8x8xf32>
    %73 = arith.subf %69, %72 : vector<8x8xf32>
    %74 = math.exp %73 : vector<8x8xf32>
    %cst_40 = arith.constant dense<0.000000e+00> : vector<8xf32>
    %75 = vector.multi_reduction <add>, %74, %cst_40 [1] : vector<8x8xf32> to vector<8xf32>
    %76 = vector.shape_cast %75 : vector<8xf32> to vector<8x1xf32>
    %77 = tpu.reciprocal %76 : vector<8x1xf32> -> vector<8x1xf32>
    %78 = vector.broadcast %77 : vector<8x1xf32> to vector<8x8xf32>
    %79 = arith.mulf %74, %78 : vector<8x8xf32>
    %c2 = arith.constant 2 : index
    %c0_41 = arith.constant 0 : index
    %c0_42 = arith.constant 0 : index
    %80 = vector.load %arg7[%c2, %c0_41, %c0_42] : memref<4x64x64xf32, #tpu.memory_space<vmem>>, vector<1x64x64xf32>
    %81 = vector.shape_cast %80 : vector<1x64x64xf32> to vector<64x64xf32>
    %cst_43 = arith.constant dense<0.000000e+00> : vector<8x64xf32>
    %82 = tpu.matmul %1, %81, %cst_43 {dimension_numbers = #tpu.dot_dimension_numbers<[1], [0], [0], [1], [0, 0, 1, 1], [], []>} : vector<8x64xf32>, vector<64x64xf32>, vector<8x64xf32> -> vector<8x64xf32>
    %c2_44 = arith.constant 2 : index
    %c0_45 = arith.constant 0 : index
    %c0_46 = arith.constant 0 : index
    %83 = vector.load %arg8[%c2_44, %c0_45, %c0_46] : memref<4x1x64xf32, #tpu.memory_space<vmem>>, vector<1x1x64xf32>
    %84 = vector.shape_cast %83 : vector<1x1x64xf32> to vector<1x64xf32>
    %85 = vector.broadcast %84 : vector<1x64xf32> to vector<8x64xf32>
    %86 = arith.addf %82, %85 : vector<8x64xf32>
    %cst_47 = arith.constant dense<0.000000e+00> : vector<8x64xf32>
    %87 = tpu.matmul %79, %86, %cst_47 {dimension_numbers = #tpu.dot_dimension_numbers<[1], [0], [0], [1], [0, 0, 1, 1], [], []>} : vector<8x8xf32>, vector<8x64xf32>, vector<8x64xf32> -> vector<8x64xf32>
    %88 = arith.addf %63, %87 : vector<8x64xf32>
    %89 = vector.extract_strided_slice %7 {offsets = [0, 48], sizes = [8, 16], strides = [1, 1]} : vector<8x64xf32> to vector<8x16xf32>
    %90 = vector.extract_strided_slice %12 {offsets = [0, 48], sizes = [8, 16], strides = [1, 1]} : vector<8x64xf32> to vector<8x16xf32>
    %cst_48 = arith.constant dense<0.000000e+00> : vector<8x8xf32>
    %91 = tpu.matmul %89, %90, %cst_48 {dimension_numbers = #tpu.dot_dimension_numbers<[1], [1], [0], [0], [0, 0, 1, 0], [], []>} : vector<8x16xf32>, vector<8x16xf32>, vector<8x8xf32> -> vector<8x8xf32>
    %cst_49 = arith.constant 2.500000e-01 : f32
    %92 = vector.broadcast %cst_49 : f32 to vector<8x8xf32>
    %93 = arith.mulf %91, %92 : vector<8x8xf32>
    %94 = arith.addf %93, %2 : vector<8x8xf32>
    %cst_50 = arith.constant dense<0xFF800000> : vector<8xf32>
    %95 = vector.multi_reduction <maximumf>, %94, %cst_50 [1] : vector<8x8xf32> to vector<8xf32>
    %96 = vector.shape_cast %95 : vector<8xf32> to vector<8x1xf32>
    %97 = vector.broadcast %96 : vector<8x1xf32> to vector<8x8xf32>
    %98 = arith.subf %94, %97 : vector<8x8xf32>
    %99 = math.exp %98 : vector<8x8xf32>
    %cst_51 = arith.constant dense<0.000000e+00> : vector<8xf32>
    %100 = vector.multi_reduction <add>, %99, %cst_51 [1] : vector<8x8xf32> to vector<8xf32>
    %101 = vector.shape_cast %100 : vector<8xf32> to vector<8x1xf32>
    %102 = tpu.reciprocal %101 : vector<8x1xf32> -> vector<8x1xf32>
    %103 = vector.broadcast %102 : vector<8x1xf32> to vector<8x8xf32>
    %104 = arith.mulf %99, %103 : vector<8x8xf32>
    %c3 = arith.constant 3 : index
    %c0_52 = arith.constant 0 : index
    %c0_53 = arith.constant 0 : index
    %105 = vector.load %arg7[%c3, %c0_52, %c0_53] : memref<4x64x64xf32, #tpu.memory_space<vmem>>, vector<1x64x64xf32>
    %106 = vector.shape_cast %105 : vector<1x64x64xf32> to vector<64x64xf32>
    %cst_54 = arith.constant dense<0.000000e+00> : vector<8x64xf32>
    %107 = tpu.matmul %1, %106, %cst_54 {dimension_numbers = #tpu.dot_dimension_numbers<[1], [0], [0], [1], [0, 0, 1, 1], [], []>} : vector<8x64xf32>, vector<64x64xf32>, vector<8x64xf32> -> vector<8x64xf32>
    %c3_55 = arith.constant 3 : index
    %c0_56 = arith.constant 0 : index
    %c0_57 = arith.constant 0 : index
    %108 = vector.load %arg8[%c3_55, %c0_56, %c0_57] : memref<4x1x64xf32, #tpu.memory_space<vmem>>, vector<1x1x64xf32>
    %109 = vector.shape_cast %108 : vector<1x1x64xf32> to vector<1x64xf32>
    %110 = vector.broadcast %109 : vector<1x64xf32> to vector<8x64xf32>
    %111 = arith.addf %107, %110 : vector<8x64xf32>
    %cst_58 = arith.constant dense<0.000000e+00> : vector<8x64xf32>
    %112 = tpu.matmul %104, %111, %cst_58 {dimension_numbers = #tpu.dot_dimension_numbers<[1], [0], [0], [1], [0, 0, 1, 1], [], []>} : vector<8x8xf32>, vector<8x64xf32>, vector<8x64xf32> -> vector<8x64xf32>
    %113 = arith.addf %88, %112 : vector<8x64xf32>
    %c0_59 = arith.constant 0 : index
    %c0_60 = arith.constant 0 : index
    %114 = vector.load %arg9[%c0_59, %c0_60] : memref<1x64xf32, #tpu.memory_space<vmem>>, vector<1x64xf32>
    %115 = vector.broadcast %114 : vector<1x64xf32> to vector<8x64xf32>
    %116 = arith.addf %113, %115 : vector<8x64xf32>
    %c0_61 = arith.constant 0 : index
    %c0_62 = arith.constant 0 : index
    %c0_63 = arith.constant 0 : index
    %117 = vector.load %arg10[%c0_61, %c0_62, %c0_63] : memref<1x8x64xf32, #tpu.memory_space<vmem>>, vector<1x8x64xf32>
    %118 = vector.shape_cast %117 : vector<1x8x64xf32> to vector<8x64xf32>
    %119 = vector.shape_cast %116 : vector<8x64xf32> to vector<1x8x64xf32>
    tpu.vector_store %arg10[%c0_61, %c0_62, %c0_63], %119 {strides = array<i32>} : memref<1x8x64xf32, #tpu.memory_space<vmem>>, vector<1x8x64xf32>,
    return
  }
  func.func @transform_0(%arg0: i32) -> (i32, i32, i32) {
    %c0_i32 = arith.constant 0 : i32
    %c0_i32_0 = arith.constant 0 : i32
    %c0_i32_1 = arith.constant 0 : i32
    return %arg0, %c0_i32, %c0_i32_0 : i32, i32, i32
  }
  func.func @transform_1(%arg0: i32) -> (i32, i32) {
    %c0_i32 = arith.constant 0 : i32
    %c0_i32_0 = arith.constant 0 : i32
    %c0_i32_1 = arith.constant 0 : i32
    return %c0_i32, %c0_i32_0 : i32, i32
  }
  func.func @transform_2(%arg0: i32) -> (i32, i32) {
    %c0_i32 = arith.constant 0 : i32
    %c0_i32_0 = arith.constant 0 : i32
    %c0_i32_1 = arith.constant 0 : i32
    return %c0_i32, %c0_i32_0 : i32, i32
  }
  func.func @transform_3(%arg0: i32) -> (i32, i32) {
    %c0_i32 = arith.constant 0 : i32
    %c0_i32_0 = arith.constant 0 : i32
    %c0_i32_1 = arith.constant 0 : i32
    return %c0_i32, %c0_i32_0 : i32, i32
  }
  func.func @transform_4(%arg0: i32) -> (i32, i32) {
    %c0_i32 = arith.constant 0 : i32
    %c0_i32_0 = arith.constant 0 : i32
    %c0_i32_1 = arith.constant 0 : i32
    return %c0_i32, %c0_i32_0 : i32, i32
  }
  func.func @transform_5(%arg0: i32) -> (i32, i32) {
    %c0_i32 = arith.constant 0 : i32
    %c0_i32_0 = arith.constant 0 : i32
    %c0_i32_1 = arith.constant 0 : i32
    return %c0_i32, %c0_i32_0 : i32, i32
  }
  func.func @transform_6(%arg0: i32) -> (i32, i32, i32) {
    %c0_i32 = arith.constant 0 : i32
    %c0_i32_0 = arith.constant 0 : i32
    %c0_i32_1 = arith.constant 0 : i32
    %c0_i32_2 = arith.constant 0 : i32
    return %c0_i32, %c0_i32_0, %c0_i32_1 : i32, i32, i32
  }
  func.func @transform_7(%arg0: i32) -> (i32, i32, i32) {
    %c0_i32 = arith.constant 0 : i32
    %c0_i32_0 = arith.constant 0 : i32
    %c0_i32_1 = arith.constant 0 : i32
    %c0_i32_2 = arith.constant 0 : i32
    return %c0_i32, %c0_i32_0, %c0_i32_1 : i32, i32, i32
  }
  func.func @transform_8(%arg0: i32) -> (i32, i32) {
    %c0_i32 = arith.constant 0 : i32
    %c0_i32_0 = arith.constant 0 : i32
    %c0_i32_1 = arith.constant 0 : i32
    return %c0_i32, %c0_i32_0 : i32, i32
  }
  func.func @transform_9(%arg0: i32) -> (i32, i32, i32) {
    %c0_i32 = arith.constant 0 : i32
    %c0_i32_0 = arith.constant 0 : i32
    %c0_i32_1 = arith.constant 0 : i32
    return %arg0, %c0_i32, %c0_i32_0 : i32, i32, i32
  }
}

</mosaic_0001>

<bundles_post_ra>
// kernel: tpu_custom_call.1
= control target key start
LH: loop header
LB: loop body
LE: loop exit
PB: predicated region body
PF: predicated region fallthrough
CT: control target
= control target key end

     0   :  { %s2873_s0 = inlined_call_operand.hbm [shape: f32[4,8,64], index: 0, kind: input, shape index: {}]   ;;  %s2874_s1 = inlined_call_operand.hbm [shape: f32[8,8], index: 1, kind: input, shape index: {}]   ;;  %s2875_s2 = inlined_call_operand.hbm [shape: f32[64,64], index: 2, kind: input, shape index: {}]   ;;  %s2876_s3 = inlined_call_operand.vmem [shape: f32[1,64], index: 3, kind: input, shape index: {}]   ;;  %s2877_s4 = inlined_call_operand.hbm [shape: f32[64,64], index: 4, kind: input, shape index: {}]   ;;  %s2878_s5 = inlined_call_operand.vmem [shape: f32[1,64], index: 5, kind: input, shape index: {}]   ;;  %s2879_s6 = inlined_call_operand.hbm [shape: f32[4,64,64], index: 6, kind: input, shape index: {}]   ;;  %s2880_s7 = inlined_call_operand.vmem [shape: f32[4,1,64], index: 7, kind: input, shape index: {}]   ;;  %s2881_s8 = inlined_call_operand.vmem [shape: f32[1,64], index: 8, kind: input, shape index: {}]   ;;  %s2882_s9 = inlined_call_operand.hbm [shape: f32[4,8,64], index: 9, kind: output, shape index: {}]  }
   0x1   :  { %2886 = sst [smem:[#allocation16_spill]] %s2874_s1 }
   0x2   :  { %2887 = sst [smem:[#allocation17_spill]] %s2875_s2 }
   0x3   :  { %14 = vsyncpa [#allocation3], 0 }
   0x4   :  { %16 = vsyncpa [#allocation3 + $0x1], 0 }
   0x5   :  { %17 = vsyncpa [#allocation6], 0 }
   0x6   :  { %18 = vsyncpa [#allocation9], 0 }
   0x7   :  { %19 = vsyncpa [#allocation4], 0 }
   0x8   :  { %21 = vsyncpa [#allocation4 + $0x1], 0  ;;  %s2452_s30 = smov 0   ;;  %s2454_s10 = smov 0  }
   0x9   :  { %s2456_s11 = smov 0   ;;  %s2458_s12 = smov 0  }
   0xa LB: > { %s2388_s13 = smov [#allocation5]   ;;  %s2473_s15 = sadd.s32 4294967295, %s2386_s12   ;;  %s2386_s12 = sphi %s2458_s12, %s2909_s12   ;;  %s2382_s11 = sphi %s2456_s11, %s2908_s11   ;;  %s2378_s10 = sphi %s2454_s10, %s2907_s10   ;;  %s2374_s30 = sphi %s2452_s30, %s2906_s30  }
   0xb   : > { %s265_s14 = sshll.u32 %s2388_s13, 4  ;;  %p1716_p0 = scmp.ge.s32.totalorder %s2386_s12, 1  ;;  %s266_s14 = int_to_ptr.vmem [resolvable:$true] %s265_s14 }
   0xc   : > { %p2883_p1 = scmp.eq.s32.totalorder %s2473_s15, 0  ;;  %p252_p2 = scmp.lt.s32.totalorder %s2386_s12, 5 }
   0xd   : > { %s2389_s17 = smov [#allocation8]   ;;  %s2390_s20 = smov [#allocation7]  }
   0xe   : > { %p2478_p3 = pnand %p1716_p0, %p252_p2  ;;  %s291_s18 = sshll.u32 %s2389_s17, 4  ;;  %s2490_s18 = int_to_ptr.vmem [resolvable:$true] %s291_s18 }
   0xf   : > { %s275_s21 = sshll.u32 %s2390_s20, 4  ;;  %s2890_s1 = sld [smem:[#allocation16_spill]]  ;;  %s2492_s21 = int_to_ptr.vmem [resolvable:$true] %s275_s21 }
  0x10   : > { %s2888_s16 = scalar_select %p2478_p3, 1, 0 }
  0x11   : > { %p2079_p4 = pneg %p2478_p3 }
  0x13   : > { %p2486_p5 = pnand %p2079_p4, %p2883_p1 }
  0x15   : > { %s2170_s24 = scalar_lea.hbm %s2890_s1, 128  ;;  %p2502_p7 = pneg %p2486_p5 }
  0x16   : > { %p2171_p6 = scmp.ne.s32.totalorder %s2890_s1, %s2170_s24  ;;  %p2177_p10 = scmp.lt.u32.totalorder %s2170_s24, %s2890_s1 }
  0x18   : > { %p2173_p8 = pnand %p2502_p7, %p2171_p6 }
  0x1a   : > { %p2174_p9 = pneg %p2173_p8 }
  0x1c   : > { %p2179_p11 = pnand %p2177_p10, %p2174_p9 }
  0x1e   : > { %2182 = shalt.err (!%p2179_p11)
}
  0x1f   : > { %s2183_s13 = scalar_lea.vmem %s266_s14, 128  ;;  %p2191_p2 = scmp.lt.s32.totalorder %s266_s14, %s266_s14 }
  0x20   : > { %p2184_p12 = scmp.ne.s32.totalorder %s266_s14, %s2183_s13  ;;  %p2192_p4 = scmp.lt.s32.totalorder %s2183_s13, %s2183_s13 }
  0x22   : > { %p2186_p13 = pnand %p2184_p12, %p2502_p7  ;;  %p2193_p1 = por %p2192_p4, %p2191_p2 }
  0x24   : > { %p2187_p0 = pneg %p2186_p13 }
  0x26   : > { %p2194_p3 = pnand %p2193_p1, %p2187_p0 }
  0x28   : > { %2197 = shalt.err (!%p2194_p3)
}
  0x29   : > { %2082 = dma.hbm_to_vmem [thread:$0]  (!%p2486_p5), %s2890_s1, 128, %s266_s14, [#allocation6]  }
  0x2a   : > { %s2198_s24 = scalar_lea.hbm %s2877_s4, 1024 }
  0x2b   : > { %p2199_p6 = scmp.ne.s32.totalorder %s2877_s4, %s2198_s24  ;;  %p2205_p1 = scmp.lt.u32.totalorder %s2198_s24, %s2877_s4 }
  0x2d   : > { %p2201_p8 = pnand %p2199_p6, %p2502_p7 }
  0x2f   : > { %p2202_p9 = pneg %p2201_p8 }
  0x31   : > { %p2207_p3 = pnand %p2205_p1, %p2202_p9 }
  0x33   : > { %2210 = shalt.err (!%p2207_p3)
}
  0x34   : > { %s2211_s14 = scalar_lea.vmem %s2490_s18, 1024  ;;  %p2219_p13 = scmp.lt.s32.totalorder %s2490_s18, %s2490_s18 }
  0x35   : > { %p2212_p10 = scmp.ne.s32.totalorder %s2490_s18, %s2211_s14  ;;  %p2220_p0 = scmp.lt.s32.totalorder %s2211_s14, %s2211_s14 }
  0x37   : > { %p2214_p11 = pnand %p2212_p10, %p2502_p7  ;;  %p2221_p2 = por %p2220_p0, %p2219_p13 }
  0x39   : > { %p2215_p12 = pneg %p2214_p11 }
  0x3b   : > { %p2222_p4 = pnand %p2221_p2, %p2215_p12 }
  0x3d   : > { %2225 = shalt.err (!%p2222_p4)
}
  0x3e   : > { %s2391_s13 = smov 128   ;;  %s2392_s17 = smov 8  }
  0x3f   : > { %2088 = dma.hbm_to_vmem [thread:$0]  (!%p2486_p5), %s2877_s4, 1024, %s2490_s18, [#allocation9], %s2391_s13, %s2391_s13, %s2392_s17  }
  0x40   : > { %s2892_s2 = sld [smem:[#allocation17_spill]] }
  0x46   : > { %s2226_s25 = scalar_lea.hbm %s2892_s2, 1024 }
  0x47   : > { %p2227_p6 = scmp.ne.s32.totalorder %s2892_s2, %s2226_s25  ;;  %p2233_p1 = scmp.lt.u32.totalorder %s2226_s25, %s2892_s2 }
  0x49   : > { %p2229_p8 = pnand %p2227_p6, %p2502_p7 }
  0x4b   : > { %p2230_p9 = pneg %p2229_p8 }
  0x4d   : > { %p2235_p3 = pnand %p2233_p1, %p2230_p9 }
  0x4f   : > { %2238 = shalt.err (!%p2235_p3)
}
  0x50   : > { %s2239_s18 = scalar_lea.vmem %s2492_s21, 1024  ;;  %p2247_p13 = scmp.lt.s32.totalorder %s2492_s21, %s2492_s21 }
  0x51   : > { %p2240_p10 = scmp.ne.s32.totalorder %s2492_s21, %s2239_s18  ;;  %p2248_p0 = scmp.lt.s32.totalorder %s2239_s18, %s2239_s18 }
  0x53   : > { %p2242_p11 = pnand %p2240_p10, %p2502_p7  ;;  %p2249_p2 = por %p2248_p0, %p2247_p13 }
  0x55   : > { %p2243_p12 = pneg %p2242_p11 }
  0x57   : > { %p2250_p4 = pnand %p2249_p2, %p2243_p12 }
  0x59   : > { %2253 = shalt.err (!%p2250_p4)
}
  0x5a   : > { %2085 = dma.hbm_to_vmem [thread:$0]  (!%p2486_p5), %s2892_s2, 1024, %s2492_s21, [#allocation6], %s2391_s13, %s2391_s13, %s2392_s17  }
  0x5b   : > { %s2393_s23 = smov [#allocation10]   ;;  %s2254_s28 = scalar_lea.hbm %s2879_s6, 4096 }
  0x5c   : > { %s307_s24 = sshll.u32 %s2393_s23, 4  ;;  %p2255_p6 = scmp.ne.s32.totalorder %s2879_s6, %s2254_s28  ;;  %s308_s24 = int_to_ptr.vmem [resolvable:$true] %s307_s24 }
  0x5d   : > { %p2261_p1 = scmp.lt.u32.totalorder %s2254_s28, %s2879_s6 }
  0x5e   : > { %p2257_p8 = pnand %p2255_p6, %p2502_p7 }
  0x60   : > { %p2258_p9 = pneg %p2257_p8 }
  0x62   : > { %p2263_p3 = pnand %p2261_p1, %p2258_p9 }
  0x64   : > { %2266 = shalt.err (!%p2263_p3)
}
  0x65   : > { %s2267_s21 = scalar_lea.vmem %s308_s24, 4096  ;;  %p2275_p13 = scmp.lt.s32.totalorder %s308_s24, %s308_s24 }
  0x66   : > { %p2268_p10 = scmp.ne.s32.totalorder %s308_s24, %s2267_s21  ;;  %p2276_p0 = scmp.lt.s32.totalorder %s2267_s21, %s2267_s21 }
  0x68   : > { %p2270_p11 = pnand %p2268_p10, %p2502_p7  ;;  %p2277_p2 = por %p2276_p0, %p2275_p13 }
  0x6a   : > { %p2271_p12 = pneg %p2270_p11 }
  0x6c   : > { %p2278_p4 = pnand %p2277_p2, %p2271_p12 }
  0x6e   : > { %2281 = shalt.err (!%p2278_p4)
}
  0x6f   : > { %2091 = dma.hbm_to_vmem [thread:$0]  (!%p2486_p5), %s2879_s6, 4096, %s308_s24, [#allocation9], %s2391_s13, %s2391_s13, %s2392_s17  }
  0x70   : > { %s1715_s19 = sadd.s32 4294967294, %s2386_s12   ;;  %s2593_s27 = sadd.s32 1, %s2386_s12  }
  0x71   : > { %s31_s22 = ssub.s32 %s2386_s12, %s2593_s27  ;;  %s34_s23 = sadd.s32 1, %s2382_s11 }
  0x72   : > { %p32_p7 = scmp.eq.s32.totalorder %s31_s22, 0  ;;  %p41_p6 = scmp.ne.s32.totalorder %s2382_s11, %s2378_s10 }
  0x73   : > { %p42_p8 = scmp.eq.s32.totalorder %s2386_s12, 0  ;;  %p47_p9 = scmp.ne.s32.totalorder %s2378_s10, %s2374_s30 }
  0x74   : > { %s2604_s25 = scalar_select %p32_p7, %s2382_s11, %s34_s23  }
  0x75   : > { %p2606_p1 = por %p42_p8, %p41_p6  ;;  %p2894_p3 = scmp.eq.s32.totalorder %s2473_s15, 0 }
  0x76   : > { %p239_p10 = scmp.eq.s32.totalorder %s2473_s15, 3  ;;  %p245_p11 = scmp.eq.s32.totalorder %s1715_s19, 3 }
  0x77   : > { %p2612_p5 = por %p2894_p3, %p47_p9  ;;  %p2104_p12 = scmp.lt.s32.totalorder %s2386_s12, 4 }
  0x78   : > { %s327_s17 = sand.u32 1, %s2382_s11   ;;  %p2619_p13 = por %p239_p10, %p41_p6 }
  0x79   : > { %p2623_p0 = por %p245_p11, %p47_p9  ;;  %s1722_s29 = sshll.u32 %s327_s17, 3 }
  0x7a   : > { %s2896_s24 = scalar_select %p2619_p13, 1, 0 }
  0x7b   : > { %s2897_s28 = scalar_select %p2623_p0, 1, 0 }
  0x7c   : > { %s1723_s14 = sshll.u32 %s2386_s12, 7  ;;  %s331_s20 = scalar_lea.vmem [#allocation2], %s1722_s29 }
  0x7d   : > { %s2631_s1 = scalar_lea.hbm %s2873_s0, %s1723_s14  ;;  %s338_s19 = sshll.u32 %s331_s20, 4  ;;  %s2633_s19 = int_to_ptr.vmem [resolvable:$true] %s338_s19 }
  0x7e   : > { %p2637_p2 = pnand %p2104_p12, %p2606_p1  ;;  %s328_s23 = scalar_lea.sflag [#allocation3], %s327_s17 }
  0x7f   : > { %s2282_s2 = scalar_lea.hbm %s2631_s1, 128  ;;  %s2287_s18 = scalar_lea.hbm %s2873_s0, 512 }
  0x80   : > { %p2283_p4 = scmp.ne.s32.totalorder %s2631_s1, %s2282_s2  ;;  %p2284_p7 = pneg %p2637_p2 }
  0x81   : > { %p2288_p9 = scmp.lt.u32.totalorder %s2631_s1, %s2873_s0  ;;  %p2289_p1 = scmp.lt.u32.totalorder %s2287_s18, %s2282_s2 }
  0x82   : > { %p2285_p6 = pnand %p2284_p7, %p2283_p4  ;;  %p2291_p10 = scmp.lt.u32.totalorder %s2282_s2, %s2631_s1 }
  0x83   : > { %p2290_p3 = por %p2289_p1, %p2288_p9 }
  0x84   : > { %p2286_p8 = pneg %p2285_p6 }
  0x85   : > { %p2292_p11 = por %p2291_p10, %p2290_p3 }
  0x87   : > { %p2293_p12 = pnand %p2292_p11, %p2286_p8 }
  0x89   : > { %2296 = shalt.err (!%p2293_p12)
}
  0x8a   : > { %s2297_s17 = scalar_lea.vmem %s2633_s19, 128  ;;  %s2394_s20 = smov [#allocation2]  }
  0x8b   : > { %p2298_p4 = scmp.ne.s32.totalorder %s2633_s19, %s2297_s17  ;;  %s2302_s29 = sshll.u32 %s2394_s20, 4  ;;  %s2303_s29 = int_to_ptr.vmem [resolvable:$false] %s2302_s29 }
  0x8c   : > { %s2304_s14 = scalar_lea.vmem %s2303_s29, 256  ;;  %p2305_p13 = scmp.lt.s32.totalorder %s2633_s19, %s2303_s29 }
  0x8d   : > { %p2300_p6 = pnand %p2298_p4, %p2284_p7  ;;  %p2306_p9 = scmp.lt.s32.totalorder %s2304_s14, %s2297_s17 }
  0x8f   : > { %p2301_p0 = pneg %p2300_p6  ;;  %p2307_p1 = por %p2306_p9, %p2305_p13 }
  0x91   : > { %p2308_p3 = pnand %p2307_p1, %p2301_p0 }
  0x93   : > { %2311 = shalt.err (!%p2308_p3)
}
  0x94   : > { %2095 = dma.hbm_to_vmem [thread:$0]  (!%p2637_p2), %s2631_s1, 128, %s2633_s19, %s328_s23  }
  0x95   : > { %p2899_p8 = scmp.ne.s32.totalorder %s2888_s16, 0 }
  0x96   : > { %s2669_s2 = sand.u32 (!%p2899_p8), 1, %s2378_s10  }
  0x97   : > { %347 = sbr.rel (%p2899_p8) target bundleno = 2053 (0x805), region = 56  ;;  %s1725_s18 = sshll.u32 (!%p2899_p8), %s2669_s2, 3 }
  0x98   : > { %s350_s26 = scalar_lea.sflag (!%p2899_p8), [#allocation3], %s2669_s2  ;;  %s2675_s21 = scalar_lea.vmem (!%p2899_p8), [#allocation2], %s1725_s18 }
  0x9e   : > { %2357 = dma.done.wait (%p2612_p5), %s350_s26, 128  }
  0x9f   : > { %2359 = vsyncadd (%p2612_p5), %s350_s26, 4294967168  ;;  %p2900_p13 = scmp.eq.s32.totalorder %s2473_s15, 0 }
  0xa1   : > { %2361 = dma.done.wait (%p2900_p13), [#allocation6], 1152   ;;  %p2901_p0 = pmov %p2900_p13 }
  0xa3   : > { %2363 = vsyncadd (%p2901_p0), [#allocation6], 4294966144  ;;  %p2902_p2 = pmov %p2901_p0 }
  0xa4   : > { %p2903_p7 = pmov %p2901_p0 }
  0xa5   : > { %2365 = dma.done.wait (%p2902_p2), [#allocation9], 5120  }
  0xa6   : > { %2367 = vsyncadd (%p2903_p7), [#allocation9], 4294962176  ;;  %v2395_v0 = vmov 0.0|0.0   ;;  %vm2396_vm0 = vmmov 0   ;;  %v2397_v1 = vmov 0.0   ;;  %v495_v2 = vld [vmem:[#allocation8] sm:$0xff] }
  0xa7   : > { %1999 = vmatprep.subr.bf16.mxu1 %v2395_v0  ;;  %1987 = vmatprep.subr.bf16.mxu0 %v2395_v0  ;;  %v496_v3 = vld [vmem:[#allocation8 + $0x8] sm:$0xff]  ;;  %v406_v4 = vld [vmem:[#allocation7] sm:$0xff]  ;;  %v497_v7 = vld [vmem:[#allocation8 + $0x10] sm:$0xff]  ;;  %vm421_vm1 = vcmask 523264   ;;  %vm580_vm2 = vcmask 130048   ;;  %s2398_s22 = smov 96  }
  0xa8   : > { %1868 = vmatprep.mubr.msk.f32.mxu1 %vm2396_vm0, %v2397_v1  ;;  %1849 = vmatprep.mubr.msk.f32.mxu0 %vm2396_vm0, %v2397_v1  ;;  %v2000_v5 = vpack.c.bf16 %v496_v3, %v495_v2  ;;  %v407_v6 = vld [vmem:[#allocation7 + $0x8] sm:$0xff]  ;;  %v498_v8 = vld [vmem:[#allocation8 + $0x18] sm:$0xff]  ;;  %v408_v10 = vld [vmem:[#allocation7 + $0x10] sm:$0xff]  ;;  %s2399_s23 = smov 112   ;;  %vm659_vm3 = vcmask 64512   ;;  %s2400_s29 = smov 80  }
  0xa9   : > { %v1988_v9 = vpack.c.bf16 %v407_v6, %v406_v4  ;;  %v409_v11 = vld [vmem:[#allocation7 + $0x18] sm:$0xff]  ;;  %v2003_v12 = vpack.c.bf16 %v498_v8, %v497_v7  ;;  %v499_v14 = vld [vmem:[#allocation8 + $0x20] sm:$0xff]  ;;  %v500_v15 = vld [vmem:[#allocation8 + $0x28] sm:$0xff]  ;;  %s403_s17 = scalar_lea.vmem [#allocation11], %s1725_s18  ;;  %p2904_p10 = scmp.ne.s32.totalorder %s2896_s24, 0 }
  0xaa   : > { %2001 = vmatpush3.bf16.msra.mxu1 %v2000_v5  ;;  %v1991_v13 = vpack.c.bf16 %v409_v11, %v408_v10  ;;  %v410_v16 = vld [vmem:[#allocation7 + $0x20] sm:$0xff]  ;;  %v411_v17 = vld [vmem:[#allocation7 + $0x28] sm:$0xff]  ;;  %v2006_v18 = vpack.c.bf16 %v500_v15, %v499_v14  ;;  %v501_v20 = vld [vmem:[#allocation8 + $0x30] sm:$0xff]  ;;  %s1607_s20 = sshll.u32 %s403_s17, 4  ;;  %s2401_s18 = smov [#allocation11]   ;;  %s2831_s20 = int_to_ptr.vmem [resolvable:$true] %s1607_s20 }
  0xab   : > { %1989 = vmatpush3.bf16.msra.mxu0 %v1988_v9  ;;  %2002 = vmatprep.subr.bf16.mxu1 %v2395_v0  ;;  %v1994_v19 = vpack.c.bf16 %v411_v17, %v410_v16  ;;  %v502_v21 = vld [vmem:[#allocation8 + $0x38] sm:$0xff]  ;;  %v412_v22 = vld [vmem:[#allocation7 + $0x30] sm:$0xff]  ;;  %v1733_v27 = vld [vmem:[%s2878_s5] ss:$0 sm:$0xff]  ;;  %s2316_s16 = sshll.u32 %s2401_s18, 4  ;;  %s2317_s16 = int_to_ptr.vmem [resolvable:$false] %s2316_s16 }
  0xac   : > { %1990 = vmatprep.subr.bf16.mxu0 %v2395_v0  ;;  %v413_v23 = vld [vmem:[#allocation7 + $0x38] sm:$0xff]  ;;  %v2009_v24 = vpack.c.bf16 %v502_v21, %v501_v20  ;;  %v2702_v26 = vld [vmem:[%s2675_s21] sm:$0xff]  ;;  %v848_v36 = vld [vmem:[#allocation10 + $0x40] sm:$0xff]  ;;  %s1594_s21 = scalar_lea.sflag [#allocation4], %s2669_s2  ;;  %s2318_s13 = scalar_lea.vmem %s2317_s16, 256 }
  0xad   : > { %v1997_v25 = vpack.c.bf16 %v413_v23, %v412_v22  ;;  %v1731_v29 = vld [vmem:[%s2876_s3] ss:$0 sm:$0xff]  ;;  %v850_v39 = vld [vmem:[#allocation10 + $0x50] sm:$0xff]  ;;  %v851_v40 = vld [vmem:[#allocation10 + $0x58] sm:$0xff]  ;;  %p2319_p4 = scmp.lt.s32.totalorder %s2831_s20, %s2317_s16 }
  0xae   : > { %2004 = vmatpush3.bf16.msra.mxu1 %v2003_v12  ;;  %v849_v37 = vld [vmem:[#allocation10 + $0x48] sm:$0xff]  ;;  %v2027_v42 = vpack.c.bf16 %v851_v40, %v850_v39  ;;  %v852_v43 = vld [vmem:[#allocation10 + $0x60] sm:$0xff]  ;;  %v854_v46 = vld [vmem:[#allocation10 + $0x70] sm:$0xff] }
  0xaf   : > { %1992 = vmatpush3.bf16.msra.mxu0 %v1991_v13  ;;  %2005 = vmatprep.subr.bf16.mxu1 %v2395_v0  ;;  %v2024_v38 = vpack.c.bf16 %v849_v37, %v848_v36  ;;  %v853_v44 = vld [vmem:[#allocation10 + $0x68] sm:$0xff]  ;;  %v855_v47 = vld [vmem:[#allocation10 + $0x78] sm:$0xff]  ;;  %v671_v57 = vld [vmem:[#allocation10] sm:$0xff] }
  0xb0   : > { %1993 = vmatprep.subr.bf16.mxu0 %v2395_v0  ;;  %v2030_v45 = vpack.c.bf16 %v853_v44, %v852_v43  ;;  %v2033_v48 = vpack.c.bf16 %v855_v47, %v854_v46  ;;  %v2753_v52 = vld [vmem:[#allocation5] sm:$0xff]  ;;  %v672_v58 = vld [vmem:[#allocation10 + $0x8] sm:$0xff]  ;;  %v673_v59 = vld [vmem:[#allocation10 + $0x10] sm:$0xff] }
  0xb1   : > { %v2012_v60 = vpack.c.bf16 %v672_v58, %v671_v57  ;;  %v674_v61 = vld [vmem:[#allocation10 + $0x18] sm:$0xff]  ;;  %v675_v63 = vld [vmem:[#allocation10 + $0x20] sm:$0xff]  ;;  %v676_v2 = vld [vmem:[#allocation10 + $0x28] sm:$0xff] }
  0xb2   : > { %2007 = vmatpush3.bf16.msra.mxu1 %v2006_v18  ;;  %v2015_v62 = vpack.c.bf16 %v674_v61, %v673_v59  ;;  %v2018_v3 = vpack.c.bf16 %v676_v2, %v675_v63  ;;  %v677_v4 = vld [vmem:[#allocation10 + $0x30] sm:$0xff]  ;;  %v678_v5 = vld [vmem:[#allocation10 + $0x38] sm:$0xff]  ;;  %v1742_v12 = vld [vmem:[%s2880_s7 + $0x1] ss:$0 sm:$0xff] }
  0xb3   : > { %1995 = vmatpush3.bf16.msra.mxu0 %v1994_v19  ;;  %2008 = vmatprep.subr.bf16.mxu1 %v2395_v0  ;;  %v2021_v6 = vpack.c.bf16 %v678_v5, %v677_v4  ;;  %v1172_v46 = vld [vmem:[#allocation10 + $0x80] sm:$0xff]  ;;  %v1173_v47 = vld [vmem:[#allocation10 + $0x88] sm:$0xff]  ;;  %v1178_v57 = vld [vmem:[#allocation10 + $0xb0] sm:$0xff] }
  0xb4   : > { %1996 = vmatprep.subr.bf16.mxu0 %v2395_v0  ;;  %v1179_v58 = vld [vmem:[#allocation10 + $0xb8] sm:$0xff]  ;;  %v1749_v4 = vld [vmem:[%s2880_s7 + $0x2] ss:$0 sm:$0xff] }
  0xb5   : > { %v2045_v59 = vpack.c.bf16 %v1179_v58, %v1178_v57 }
  0xb6   : > { %2010 = vmatpush3.bf16.msra.mxu1 %v2009_v24 }
  0xb7   : > { %1998 = vmatpush3.bf16.msra.mxu0 %v1997_v25  ;;  %1871 = vmatprep.subr.mxu1 %v2397_v1 }
  0xb8   : > { %1895 = vmatprep.subr.mxu0 %v2397_v1 }
  0xb9   : > { %1869 = vmatmul.mubr.msk.f32.vlgmr.msra.gmra.mrb[0].mxu1 %vm421_vm1, %v2702_v26 }
  0xba   : > { %1850 = vmatmul.mubr.msk.f32.vlgmr.msra.gmra.mrb[0].mxu0 %vm421_vm1, %v2702_v26  ;;  %1873 = vmatprep.mubr.msk.f32.mxu1 %vm2396_vm0, %v2397_v1 }
  0xbb   : > { %1897 = vmatprep.mubr.msk.f32.mxu0 %vm2396_vm0, %v2397_v1 }
 0x18c   : > { %v576_v28 = vpop.f32.mrb[0].mxu1 }
 0x18d   : > { %v2720_v30 = vadd.f32 %v1733_v27, %v576_v28  ;;  %v1870_v31 = vpop.f32.mrb[1].mxu1  ;;  %v491_v32 = vpop.f32.mrb[0].mxu0 }
 0x18e   : > { %v1851_v33 = vpop.f32.mrb[1].mxu0  ;;  %v2724_v34 = vadd.f32 %v1731_v29, %v491_v32 }
 0x18f   : > { %1082 = vrot.lane.b32.xlu1 %v2720_v30, %s2398_s22  ;;  %758 = vrot.lane.b32.xlu0 %v2720_v30, %s2399_s23 }
 0x190   : > { %1872 = vmatpush3.xpose.msk.msra.mxu1 %vm580_vm2, %v2720_v30 }
 0x191   : > { %2011 = vmatprep.subr.bf16.mxu1 %v2395_v0 }
 0x193   : > { %1874 = vmatmul.mubr.msk.f32.vlgmr.msra.gmra.mrb[2].mxu1 %vm580_vm2, %v2724_v34  ;;  %1080 = vrot.lane.b32.xlu1 %v2724_v34, %s2398_s22 }
 0x194   : > { %756 = vrot.lane.b32.xlu0 %v2724_v34, %s2399_s23  ;;  %1892 = vmatprep.mubr.msk.f32.mxu1 %vm2396_vm0, %v2397_v1  ;;  %s1760_s23 = sshll.u32 %s2473_s15, 7  ;;  %s2312_s15 = scalar_lea.vmem %s2831_s20, 128 }
 0x195   : > { %2013 = vmatpush3.bf16.msra.mxu1 %v2012_v60  ;;  %s2829_s26 = scalar_lea.hbm %s2882_s9, %s1760_s23  ;;  %p2313_p5 = scmp.ne.s32.totalorder %s2831_s20, %s2312_s15 }
 0x196   : > { %2014 = vmatprep.subr.bf16.mxu1 %v2395_v0  ;;  %p2320_p6 = scmp.lt.s32.totalorder %s2318_s13, %s2312_s15 }
 0x197   : > { %p2314_p11 = pnand %p2313_p5, %p2904_p10 }
 0x198   : > { %p2321_p9 = por %p2320_p6, %p2319_p4 }
 0x199   : > { %2016 = vmatpush3.bf16.msra.mxu1 %v2015_v62  ;;  %p2315_p12 = pneg %p2314_p11 }
 0x19a   : > { %2017 = vmatprep.subr.bf16.mxu1 %v2395_v0 }
 0x19b   : > { %p2322_p1 = pnand %p2321_p9, %p2315_p12 }
 0x19d   : > { %2019 = vmatpush3.bf16.msra.mxu1 %v2018_v3 }
 0x19e   : > { %2020 = vmatprep.subr.bf16.mxu1 %v2395_v0 }
 0x1a1   : > { %2022 = vmatpush3.bf16.msra.mxu1 %v2021_v6 }
 0x1a2   : > { %1919 = vmatprep.subr.mxu1 %v2397_v1 }
 0x1a4   : > { %1893 = vmatmul.mubr.msk.f32.vlgmr.msra.gmra.mrb[4].mxu1 %vm421_vm1, %v2702_v26 }
 0x1a5   : > { %1921 = vmatprep.mubr.msk.f32.mxu1 %vm2396_vm0, %v2397_v1 }
 0x201   : > { %v759_v35 = vpop.permute.xlu0 %758  ;;  %v1083_v49 = vpop.permute.xlu1 %1082 }
 0x202   : > { %1896 = vmatpush3.xpose.msk.msra.mxu0 %vm580_vm2, %v759_v35 }
 0x203   : > { %2023 = vmatprep.subr.bf16.mxu0 %v2395_v0 }
 0x205   : > { %v1081_v50 = vpop.permute.xlu1 %1080 }
 0x206   : > { %v757_v41 = vpop.permute.xlu0 %756 }
 0x207   : > { %1898 = vmatmul.mubr.msk.f32.vlgmr.msra.gmra.mrb[2].mxu0 %vm580_vm2, %v757_v41 }
 0x208   : > { %2025 = vmatpush3.bf16.msra.mxu0 %v2024_v38  ;;  %1916 = vmatprep.mubr.msk.f32.mxu0 %vm2396_vm0, %v2397_v1 }
 0x209   : > { %2026 = vmatprep.subr.bf16.mxu0 %v2395_v0 }
 0x20c   : > { %2028 = vmatpush3.bf16.msra.mxu0 %v2027_v42  ;;  %v1737_v42 = vld [vmem:[%s2880_s7] ss:$0 sm:$0xff] }
 0x20d   : > { %2029 = vmatprep.subr.bf16.mxu0 %v2395_v0 }
 0x210   : > { %2031 = vmatpush3.bf16.msra.mxu0 %v2030_v45 }
 0x211   : > { %2032 = vmatprep.subr.bf16.mxu0 %v2395_v0 }
 0x214   : > { %2034 = vmatpush3.bf16.msra.mxu0 %v2033_v48 }
 0x215   : > { %1929 = vmatprep.subr.mxu0 %v2397_v1 }
 0x217   : > { %1917 = vmatmul.mubr.msk.f32.vlgmr.msra.gmra.mrb[4].mxu0 %vm421_vm1, %v2702_v26 }
 0x218   : > { %1931 = vmatprep.mubr.msk.f32.mxu0 %vm2396_vm0, %v2397_v1 }
 0x21d   : > { %1930 = vmatpush3.xpose.msk.msra.mxu0 %vm580_vm2, %v1083_v49 }
 0x21e   : > { %1953 = vmatprep.subr.mxu0 %v2397_v1 }
 0x220   : > { %1932 = vmatmul.mubr.msk.f32.vlgmr.msra.gmra.mrb[6].mxu0 %vm580_vm2, %v1081_v50  ;;  %v1174_v50 = vld [vmem:[#allocation10 + $0x90] sm:$0xff] }
 0x221   : > { %1955 = vmatprep.mubr.msk.f32.mxu0 %vm2396_vm0, %v2397_v1 }
 0x266   : > { %v653_v51 = vpop.f32.mrb[2].mxu1 }
 0x267   : > { %v657_v53 = vmul.f32 0.25, %v653_v51  ;;  %v1875_v54 = vpop.f32.mrb[3].mxu1  ;;  %v1175_v51 = vld [vmem:[#allocation10 + $0x98] sm:$0xff] }
 0x268   : > { %v1176_v54 = vld [vmem:[#allocation10 + $0xa0] sm:$0xff] }
 0x269   : > { %v658_v55 = vadd.f32 %v657_v53, %v2753_v52  ;;  %v2039_v53 = vpack.c.bf16 %v1175_v51, %v1174_v50 }
 0x26b   : > { %v660_v56 = vsel %vm659_vm3, %v658_v55, -inf }
 0x26c   : > { %661 = vmax.xlane.f32.xlu1 %v660_v56 }
 0x277   : > { %v752_v38 = vpop.f32.mrb[4].mxu1 }
 0x278   : > { %v1894_v39 = vpop.f32.mrb[5].mxu1  ;;  %v753_v44 = vadd.f32 %v1737_v42, %v752_v38 }
 0x2da   : > { %v830_v7 = vpop.f32.mrb[2].mxu0 }
 0x2db   : > { %v834_v8 = vmul.f32 0.25, %v830_v7  ;;  %v1899_v9 = vpop.f32.mrb[3].mxu0 }
 0x2dd   : > { %v835_v10 = vadd.f32 %v834_v8, %v2753_v52 }
 0x2df   : > { %v836_v11 = vsel %vm659_vm3, %v835_v10, -inf }
 0x2e0   : > { %837 = vmax.xlane.f32.xlu0 %v836_v11 }
 0x2ea   : > { %v930_v13 = vpop.f32.mrb[4].mxu0 }
 0x2eb   : > { %v931_v14 = vadd.f32 %v1742_v12, %v930_v13  ;;  %v1918_v15 = vpop.f32.mrb[5].mxu0  ;;  %v1424_v12 = vld [vmem:[#allocation10 + $0xc0] sm:$0xff]  ;;  %v1425_v13 = vld [vmem:[#allocation10 + $0xc8] sm:$0xff] }
 0x2ec   : > { %v2048_v15 = vpack.c.bf16 %v1425_v13, %v1424_v12 }
 0x2ed   : > { %1920 = vmatpush3.msra.mxu1 %v931_v14  ;;  %v1426_v14 = vld [vmem:[#allocation10 + $0xd0] sm:$0xff] }
 0x2ee   : > { %1924 = vmatprep.subr.mxu1 %v2397_v1 }
 0x2f3   : > { %v1154_v16 = vpop.f32.mrb[6].mxu0 }
 0x2f4   : > { %v1158_v17 = vmul.f32 0.25, %v1154_v16  ;;  %v1933_v18 = vpop.f32.mrb[7].mxu0  ;;  %v1427_v16 = vld [vmem:[#allocation10 + $0xd8] sm:$0xff] }
 0x2f5   : > { %v1428_v18 = vld [vmem:[#allocation10 + $0xe0] sm:$0xff] }
 0x2f6   : > { %v1159_v19 = vadd.f32 %v1158_v17, %v2753_v52  ;;  %v2051_v17 = vpack.c.bf16 %v1427_v16, %v1426_v14 }
 0x2f8   : > { %v1160_v20 = vsel %vm659_vm3, %v1159_v19, -inf }
 0x2f9   : > { %1161 = vmax.xlane.f32.xlu1 %v1160_v20  ;;  %v662_v21 = vpop.xlane.xlu1 %661 }
 0x2fa   : > { %v663_v22 = vsub.f32 %v658_v55, %v662_v21  ;;  %v1177_v55 = vld [vmem:[#allocation10 + $0xa8] sm:$0xff]  ;;  %v1430_v21 = vld [vmem:[#allocation10 + $0xf0] sm:$0xff] }
 0x2fb   : > { %v2042_v56 = vpack.c.bf16 %v1177_v55, %v1176_v54 }
 0x2fc   : > { %v664_v25 = vmul.f32 1.442695, %v663_v22  ;;  %v1431_v22 = vld [vmem:[#allocation10 + $0xf8] sm:$0xff] }
 0x30a   : > { %1334 = vrot.lane.b32.xlu1 %v2720_v30, %s2400_s29 }
 0x36d   : > { %v838_v23 = vpop.xlane.xlu0 %837 }
 0x36e   : > { %v839_v24 = vsub.f32 %v835_v10, %v838_v23  ;;  %v2057_v23 = vpack.c.bf16 %v1431_v22, %v1430_v21 }
 0x370   : > { %v840_v27 = vmul.f32 1.442695, %v839_v24 }
 0x372   : > { %2154 = vpow2.f32 %v840_v27 }
 0x373   : > { %2156 = vpow2.f32 %v664_v25 }
 0x37c   : > { %v2155_v28 = vpop.eup %2154 }
 0x37d   : > { %v842_v29 = vsel %vm659_vm3, %v2155_v28, 0.0  ;;  %v2157_v31 = vpop.eup %2156 }
 0x37e   : > { %843 = vadd.xlane.f32.xlu0 %v842_v29  ;;  %v666_v32 = vsel %vm659_vm3, %v2157_v31, 0.0 }
 0x382   : > { %667 = vadd.xlane.f32.xlu0 %v666_v32 }
 0x386   : > { %v1162_v33 = vpop.xlane.xlu1 %1161 }
 0x387   : > { %v1163_v35 = vsub.f32 %v1159_v19, %v1162_v33  ;;  %v1429_v19 = vld [vmem:[#allocation10 + $0xe8] sm:$0xff] }
 0x388   : > { %v2054_v20 = vpack.c.bf16 %v1429_v19, %v1428_v18 }
 0x389   : > { %v1164_v36 = vmul.f32 1.442695, %v1163_v35 }
 0x38a   : > { %v1335_v10 = vpop.permute.xlu1 %1334 }
 0x38b   : > { %2158 = vpow2.f32 %v1164_v36 }
 0x395   : > { %v2159_v30 = vpop.eup %2158 }
 0x396   : > { %v1166_v37 = vsel %vm659_vm3, %v2159_v30, 0.0 }
 0x397   : > { %1167 = vadd.xlane.f32.xlu0 %v1166_v37  ;;  %v1755_v37 = vld [vmem:[%s2880_s7 + $0x3] ss:$0 sm:$0xff] }
 0x3ad   : > { %1332 = vrot.lane.b32.xlu0 %v2724_v34, %s2400_s29  ;;  %v2036_v34 = vpack.c.bf16 %v1173_v47, %v1172_v46 }
 0x40b   : > { %v844_v40 = vpop.xlane.xlu0 %843 }
 0x40c   : > { %2160 = vrcp.f32 %v844_v40 }
 0x40f   : > { %v668_v41 = vpop.xlane.xlu0 %667 }
 0x410   : > { %2162 = vrcp.f32 %v668_v41 }
 0x416   : > { %v2161_v43 = vpop.eup %2160 }
 0x417   : > { %v846_v45 = vmul.f32 %v2161_v43, %v2155_v28  ;;  %v1758_v43 = vld [vmem:[%s2881_s8] ss:$0 sm:$0xff] }
 0x419   : > { %1922 = vmatmul.mubr.msk.f32.vlgmr.msra.gmra.mrb[6].mxu1 %vm659_vm3, %v846_v45 }
 0x41a   : > { %v2163_v48 = vpop.eup %2162  ;;  %1925 = vmatpush3.msra.mxu1 %v753_v44  ;;  %1926 = vmatprep.mubr.msk.f32.mxu1 %vm2396_vm0, %v2397_v1 }
 0x41b   : > { %v670_v49 = vmul.f32 %v2163_v48, %v2157_v31  ;;  %2035 = vmatprep.subr.bf16.mxu1 %v2395_v0 }
 0x41d   : > { %1927 = vmatmul.mubr.msk.f32.vlgmr.msra.gmra.mrb[8].mxu1 %vm659_vm3, %v670_v49 }
 0x41e   : > { %2037 = vmatpush3.bf16.msra.mxu1 %v2036_v34  ;;  %1950 = vmatprep.mubr.msk.f32.mxu1 %vm2396_vm0, %v2397_v1 }
 0x41f   : > { %2038 = vmatprep.subr.bf16.mxu1 %v2395_v0 }
 0x422   : > { %2040 = vmatpush3.bf16.msra.mxu1 %v2039_v53 }
 0x423   : > { %2041 = vmatprep.subr.bf16.mxu1 %v2395_v0 }
 0x424   : > { %v1168_v3 = vpop.xlane.xlu0 %1167 }
 0x425   : > { %2164 = vrcp.f32 %v1168_v3 }
 0x426   : > { %2043 = vmatpush3.bf16.msra.mxu1 %v2042_v56 }
 0x427   : > { %2044 = vmatprep.subr.bf16.mxu1 %v2395_v0 }
 0x428   : > { %v1333_v11 = vpop.permute.xlu0 %1332 }
 0x42a   : > { %2046 = vmatpush3.bf16.msra.mxu1 %v2045_v59 }
 0x42b   : > { %1982 = vmatprep.subr.mxu1 %v2397_v1 }
 0x42d   : > { %1951 = vmatmul.mubr.msk.f32.vlgmr.msra.gmra.mrb[10].mxu1 %vm421_vm1, %v2702_v26 }
 0x42e   : > { %1984 = vmatprep.mubr.msk.f32.mxu1 %vm2396_vm0, %v2397_v1 }
 0x42f   : > { %v2165_v5 = vpop.eup %2164 }
 0x430   : > { %v1170_v9 = vmul.f32 %v2165_v5, %v2159_v30 }
 0x4ec   : > { %v1003_v60 = vpop.f32.mrb[6].mxu1 }
 0x4ed   : > { %v1923_v61 = vpop.f32.mrb[7].mxu1 }
 0x4f0   : > { %v1076_v62 = vpop.f32.mrb[8].mxu1 }
 0x4f1   : > { %v1077_v63 = vadd.f32 %v1076_v62, %v1003_v60  ;;  %v1928_v2 = vpop.f32.mrb[9].mxu1 }
 0x500   : > { %v1254_v6 = vpop.f32.mrb[10].mxu1 }
 0x501   : > { %v1255_v7 = vadd.f32 %v1749_v4, %v1254_v6  ;;  %v1952_v8 = vpop.f32.mrb[11].mxu1 }
 0x503   : > { %1954 = vmatpush3.msra.mxu0 %v1255_v7 }
 0x504   : > { %1956 = vmatmul.mubr.msk.f32.vlgmr.msra.gmra.mrb[8].mxu0 %vm659_vm3, %v1170_v9  ;;  %1958 = vmatprep.subr.mxu0 %v2397_v1 }
 0x505   : > { %1960 = vmatprep.mubr.msk.f32.mxu0 %vm2396_vm0, %v2397_v1 }
 0x50a   : > { %1959 = vmatpush3.xpose.msk.msra.mxu0 %vm580_vm2, %v1335_v10 }
 0x50b   : > { %2047 = vmatprep.subr.bf16.mxu0 %v2395_v0 }
 0x50d   : > { %1961 = vmatmul.mubr.msk.f32.vlgmr.msra.gmra.mrb[10].mxu0 %vm580_vm2, %v1333_v11 }
 0x50e   : > { %1979 = vmatprep.mubr.msk.f32.mxu0 %vm2396_vm0, %v2397_v1  ;;  %2049 = vmatpush3.bf16.msra.mxu0 %v2048_v15 }
 0x50f   : > { %2050 = vmatprep.subr.bf16.mxu0 %v2395_v0 }
 0x512   : > { %2052 = vmatpush3.bf16.msra.mxu0 %v2051_v17 }
 0x513   : > { %2053 = vmatprep.subr.bf16.mxu0 %v2395_v0 }
 0x516   : > { %2055 = vmatpush3.bf16.msra.mxu0 %v2054_v20 }
 0x517   : > { %2056 = vmatprep.subr.bf16.mxu0 %v2395_v0 }
 0x51a   : > { %2058 = vmatpush3.bf16.msra.mxu0 %v2057_v23 }
 0x51d   : > { %1980 = vmatmul.mubr.msk.f32.vlgmr.msra.gmra.mrb[12].mxu0 %vm421_vm1, %v2702_v26 }
 0x5d7   : > { %v1327_v1 = vpop.f32.mrb[8].mxu0 }
 0x5d8   : > { %v1331_v24 = vadd.f32 %v1327_v1, %v1077_v63  ;;  %v1957_v25 = vpop.f32.mrb[9].mxu0 }
 0x5e0   : > { %v1406_v27 = vpop.f32.mrb[10].mxu0 }
 0x5e1   : > { %v1410_v28 = vmul.f32 0.25, %v1406_v27  ;;  %v1962_v29 = vpop.f32.mrb[11].mxu0 }
 0x5e3   : > { %v1411_v31 = vadd.f32 %v1410_v28, %v2753_v52 }
 0x5e5   : > { %v1412_v32 = vsel %vm659_vm3, %v1411_v31, -inf }
 0x5e6   : > { %1413 = vmax.xlane.f32.xlu1 %v1412_v32 }
 0x5f0   : > { %v1506_v30 = vpop.f32.mrb[12].mxu0 }
 0x5f1   : > { %v1981_v38 = vpop.f32.mrb[13].mxu0  ;;  %v1507_v52 = vadd.f32 %v1755_v37, %v1506_v30 }
 0x5f3   : > { %1983 = vmatpush3.msra.mxu1 %v1507_v52 }
 0x673   : > { %v1414_v33 = vpop.xlane.xlu1 %1413 }
 0x674   : > { %v1415_v35 = vsub.f32 %v1411_v31, %v1414_v33 }
 0x676   : > { %v1416_v36 = vmul.f32 1.442695, %v1415_v35 }
 0x678   : > { %2166 = vpow2.f32 %v1416_v36 }
 0x682   : > { %v2167_v0 = vpop.eup %2166 }
 0x683   : > { %v1418_v26 = vsel %vm659_vm3, %v2167_v0, 0.0 }
 0x684   : > { %1419 = vadd.xlane.f32.xlu0 %v1418_v26 }
 0x711   : > { %v1420_v39 = vpop.xlane.xlu0 %1419 }
 0x712   : > { %2168 = vrcp.f32 %v1420_v39 }
 0x71c   : > { %v2169_v40 = vpop.eup %2168 }
 0x71d   : > { %v1422_v41 = vmul.f32 %v2169_v40, %v2167_v0 }
 0x71f   : > { %1985 = vmatmul.mubr.msk.f32.vlgmr.msra.gmra.mrb[12].mxu1 %vm659_vm3, %v1422_v41 }
 0x7f2   : > { %v1579_v42 = vpop.f32.mrb[12].mxu1 }
 0x7f3   : > { %v1583_v44 = vadd.f32 %v1579_v42, %v1331_v24  ;;  %v1986_v45 = vpop.f32.mrb[13].mxu1 }
 0x7f5   : > { %v1591_v46 = vadd.f32 %v1758_v43, %v1583_v44 }
 0x7f7   : > { %1592 = vst.msk [vmem:[%s403_s17] sm:$0xff] %vm421_vm1, %v1591_v46 }
 0x7f8   : > { %2325 = shalt.err (!%p2322_p1)
}
 0x7f9   : > { %s2326_s2 = scalar_lea.hbm %s2829_s26, 128  ;;  %s2330_s22 = scalar_lea.hbm %s2882_s9, 512 }
 0x7fa   : > { %p2327_p3 = scmp.ne.s32.totalorder %s2829_s26, %s2326_s2  ;;  %p2331_p0 = scmp.lt.u32.totalorder %s2829_s26, %s2882_s9 }
 0x7fb   : > { %p2332_p2 = scmp.lt.u32.totalorder %s2330_s22, %s2326_s2  ;;  %p2334_p5 = scmp.lt.u32.totalorder %s2326_s2, %s2829_s26 }
 0x7fc   : > { %p2328_p8 = pnand %p2327_p3, %p2904_p10 }
 0x7fd   : > { %p2333_p7 = por %p2332_p2, %p2331_p0 }
 0x7fe   : > { %p2329_p13 = pneg %p2328_p8 }
 0x7ff   : > { %p2335_p11 = por %p2334_p5, %p2333_p7 }
 0x801   : > { %p2336_p12 = pnand %p2335_p11, %p2329_p13 }
 0x803   : > { %2339 = shalt.err (!%p2336_p12)
}
 0x804   : > { %2077 = dma.vmem_to_hbm [thread:$0]  (%p2904_p10), %s2831_s20, 128, %s2829_s26, %s1594_s21  }
 0x805 PF: > { %p2109_p4 = scmp.ge.s32.totalorder %s2386_s12, 2  ;;  %s1619_s29 = sand.u32 1, %s2374_s30  }
 0x806   : > { %p2905_p6 = scmp.ne.s32.totalorder %s2897_s28, 0  ;;  %s1620_s14 = scalar_lea.sflag [#allocation4], %s1619_s29 }
 0x808   : > { %p2097_p9 = pnand %p2109_p4, %p2905_p6 }
 0x80a   : > { %2369 = dma.done.wait (!%p2097_p9), %s1620_s14, 128  }
 0x80b   : > { %2371 = vsyncadd (!%p2097_p9), %s1620_s14, 4294967168  ;;  %p24_p1 = scmp.ge.s32.totalorder %s2593_s27, 6   ;;  %s2906_s30 = smov %s2378_s10 }
 0x80c   : > { %s2907_s10 = smov %s2382_s11  ;;  %s2908_s11 = smov %s2604_s25 }
 0x80d   : > { %s2909_s12 = smov %s2593_s27  ;;  %26 = sbr.rel (!%p24_p1) target bundleno = 10 (0xa), region = 123 }
 0x814   :  { %1625 = vsyncpa [#allocation3], 1 }
 0x815   :  { %1627 = vsyncpa [#allocation3 + $0x1], 1 }
 0x816   :  { %1628 = vsyncpa [#allocation6], 1 }
 0x817   :  { %1629 = vsyncpa [#allocation9], 1 }
 0x818   :  { %1630 = vsyncpa [#allocation4], 1 }
 0x819   :  { %1632 = vsyncpa [#allocation4 + $0x1], 1 }

</bundles_post_ra>
